<compile_context>
chip_gen: v7x
topology: tpu7x:2x2x1
jax: 0.10.0
libtpu: 0.0.40
codegen_flags: <defaults>
</compile_context>

<pallas_src>
import functools

import jax
import jax.numpy as jnp
from jax import lax
from jax.experimental import pallas as pl
from jax.experimental.pallas import tpu as pltpu

_LANE = 128      # lane width of a vreg
_CHUNK = 512     # lanes per inner-loop sub-chunk (keeps intermediates in vregs)


def _round_up(a, m):
    return ((a + m - 1) // m) * m


def _softplus(x):
    # Numerically-stable softplus: log(1 + exp(x)).  Kept in f32 (safe on v5e).
    return jnp.maximum(x, 0.0) + jnp.log1p(jnp.exp(-jnp.abs(x)))


def _mlp_kernel(x_ref,
                w1_ref, b1_ref,
                w2_ref, b2_ref,
                w3_ref, b3_ref,
                w4_ref, b4_ref,
                o_ref, *, chunk, acts_dtype):
    """One batch tile of the fused 4-layer MLP.

    x_ref : (tb, x_in)   batch-major input block (contiguous DMA)
    wN    : (out, in)    PyTorch-native weight layout
    bN    : (out, 1)     bias, broadcast along lanes
    o_ref : (tb, x_out)  batch-major output block (contiguous writeback)

    Compute is done in the lane-dense transposed layout [features, batch];
    an inner loop over `chunk`-lane sub-chunks keeps intermediates in vregs.
    """
    # Hoist weight / bias loads (and casts) out of the chunk loop.
    w1 = w1_ref[...].astype(acts_dtype)
    w2 = w2_ref[...].astype(acts_dtype)
    w3 = w3_ref[...].astype(acts_dtype)
    w4 = w4_ref[...].astype(acts_dtype)
    b1 = b1_ref[...]
    b2 = b2_ref[...]
    b3 = b3_ref[...]
    b4 = b4_ref[...]

    n_chunks = o_ref.shape[0] // chunk

    def body(c, carry):
        base = pl.multiple_of(c * chunk, chunk)
        xc = x_ref[pl.ds(base, chunk), :].astype(acts_dtype)      # (chunk, x_in)

        # h1 = W1 @ x^T: contract the x_in axes so batch stays on the lane axis
        # (the standard A·Bᵀ / q·kᵀ MXU pattern — no explicit transpose of x).
        h = lax.dot_general(w1, xc, (((1,), (1,)), ((), ())),
                            preferred_element_type=jnp.float32) + b1
        h = _softplus(h)                                          # (H, chunk)

        h = jnp.dot(w2, h.astype(acts_dtype),
                    preferred_element_type=jnp.float32) + b2
        h = _softplus(h)

        h = jnp.dot(w3, h.astype(acts_dtype),
                    preferred_element_type=jnp.float32) + b3
        h = _softplus(h)

        out_t = jnp.dot(w4, h.astype(acts_dtype),
                        preferred_element_type=jnp.float32) + b4  # (x_out, chunk)

        # Small (x_out, chunk) -> (chunk, x_out) transpose on the idle XLU,
        # then a contiguous store into the batch-major output block.
        o_ref[pl.ds(base, chunk), :] = out_t.T.astype(o_ref.dtype)
        return carry

    lax.fori_loop(0, n_chunks, body, None, unroll=True)


@functools.partial(jax.jit, static_argnames=("batch_tile", "acts_dtype"))
def model_latent_f(x, params, *, batch_tile=2048, acts_dtype=jnp.float32):
    """Forward pass of ModelLatentF.

    x      : (N, x_in) float32
    params : dict with w1..w4 of shape (out, in) and b1..b4 of shape (out, 1)
             (PyTorch nn.Linear layout).
    Returns (N, x_out) float32.
    """
    n, x_in = x.shape
    x_out = params["w4"].shape[0]

    if batch_tile % _LANE != 0:
        raise ValueError("batch_tile must be a multiple of 128")

    # Tile selection:
    #  * as big as batch_tile to amortize the ~0.35us per-grid-step overhead,
    #  * capped at ~half the batch so the grid keeps >= 2 steps (both v7x TCs
    #    get work),
    #  * a multiple of the inner chunk so the sub-chunk loop divides exactly.
    tb = min(batch_tile, _round_up(max(1, -(-n // 2)), _LANE))
    chunk = min(_CHUNK, tb)
    tb = max(chunk, (tb // chunk) * chunk)
    grid = (pl.cdiv(n, tb),)          # ragged last block: no host-side padding

    kernel = functools.partial(_mlp_kernel, chunk=chunk, acts_dtype=acts_dtype)

    weight_args = (params["w1"], params["b1"], params["w2"], params["b2"],
                   params["w3"], params["b3"], params["w4"], params["b4"])

    in_specs = [pl.BlockSpec((tb, x_in), lambda i: (i, 0))]        # x block
    in_specs += [pl.BlockSpec(w.shape, lambda i: (0, 0))           # weights:
                 for w in weight_args]                             # grid-const
    out_spec = pl.BlockSpec((tb, x_out), lambda i: (i, 0))

    return pl.pallas_call(
        kernel,
        out_shape=jax.ShapeDtypeStruct((n, x_out), x.dtype),
        grid_spec=pltpu.PrefetchScalarGridSpec(
            num_scalar_prefetch=0,
            grid=grid,
            in_specs=in_specs,
            out_specs=out_spec,
        ),
        compiler_params=pltpu.CompilerParams(
            # Batch axis is embarrassingly parallel -> shards across the two
            # TensorCores on v7x; harmless on v5e/v6e (single TC).
            dimension_semantics=("parallel",)),
    )(x, *weight_args)


def init_params(key, x_in, h_dim, x_out):
    """nn.Linear-style U(-1/sqrt(fan_in), 1/sqrt(fan_in)) init.

    Weights are stored in PyTorch layout (out, in); biases as (out, 1).
    """
    dims = [(x_in, h_dim), (h_dim, h_dim), (h_dim, h_dim), (h_dim, x_out)]
    params = {}
    for idx, (fan_in, fan_out) in enumerate(dims, start=1):
        key, kw, kb = jax.random.split(key, 3)
        bound = 1.0 / (fan_in ** 0.5)
        params[f"w{idx}"] = jax.random.uniform(
            kw, (fan_out, fan_in), jnp.float32, minval=-bound, maxval=bound)
        params[f"b{idx}"] = jax.random.uniform(
            kb, (fan_out, 1), jnp.float32, minval=-bound, maxval=bound)
    return params


def model_latent_f_ref(x, params):
    """Pure-JAX reference of the same forward pass (PyTorch semantics)."""
    h = jax.nn.softplus(x @ params["w1"].T + params["b1"][:, 0])
    h = jax.nn.softplus(h @ params["w2"].T + params["b2"][:, 0])
    h = jax.nn.softplus(h @ params["w3"].T + params["b3"][:, 0])
    return h @ params["w4"].T + params["b4"][:, 0]


if __name__ == "__main__":
    # Shapes consistent with ModelLatentF(x_in=16, H=32, x_out=8).
    # N=200 is deliberately NOT a multiple of the tile: exercises the ragged
    # last block and (with tb=128) a 2-step "parallel" grid.
    N, X_IN, H, X_OUT = 200, 16, 32, 8

    key = jax.random.PRNGKey(0)
    key, kx = jax.random.split(key)
    x = jax.random.normal(kx, (N, X_IN), jnp.float32)
    params = init_params(key, X_IN, H, X_OUT)

    ref = model_latent_f_ref(x, params)
    out = jax.block_until_ready(model_latent_f(x, params))
    assert out.shape == (N, X_OUT)
    assert jnp.allclose(out, ref, atol=1e-5, rtol=1e-5), "mismatch (small batch)"

    # Larger batch: big tile + inner 512-lane chunk loop + ragged tail.
    N2 = 5000
    x2 = jax.random.normal(jax.random.PRNGKey(1), (N2, X_IN), jnp.float32)
    ref2 = model_latent_f_ref(x2, params)
    out2 = jax.block_until_ready(model_latent_f(x2, params, batch_tile=2048))
    assert out2.shape == (N2, X_OUT)
    assert jnp.allclose(out2, ref2, atol=1e-4, rtol=1e-4), "mismatch (large batch)"

    # bf16 matmul-operand path (recommended on v6e/v7x); f32 accumulate kept,
    # so tolerance is relaxed but still tight.
    out3 = jax.block_until_ready(
        model_latent_f(x2, params, batch_tile=2048, acts_dtype=jnp.bfloat16))
    assert jnp.allclose(out3, ref2, atol=5e-2, rtol=5e-2), "mismatch (bf16 path)"

    print("KERNEL_OK")
</pallas_src>

<mosaic_0001>
module attributes {stable_mosaic.version = 11 : i64} {
  func.func @_mlp_kernel(%arg0: i32, %arg1: memref<128x16xf32, #tpu.memory_space<vmem>>, %arg2: memref<32x16xf32, #tpu.memory_space<vmem>>, %arg3: memref<32x1xf32, #tpu.memory_space<vmem>>, %arg4: memref<32x32xf32, #tpu.memory_space<vmem>>, %arg5: memref<32x1xf32, #tpu.memory_space<vmem>>, %arg6: memref<32x32xf32, #tpu.memory_space<vmem>>, %arg7: memref<32x1xf32, #tpu.memory_space<vmem>>, %arg8: memref<8x32xf32, #tpu.memory_space<vmem>>, %arg9: memref<8x1xf32, #tpu.memory_space<vmem>>, %arg10: memref<128x8xf32, #tpu.memory_space<vmem>>) attributes {dimension_semantics = [#tpu.dimension_semantics<parallel>], iteration_bounds = array<i64: 2>, scalar_prefetch = 0 : i64, scratch_operands = 0 : i64, tpu.core_type = #tpu.core_type<tc>, window_params = [{transform_indices = @transform_0, window_bounds = array<i64: 128, 16>}, {pipeline_mode = #tpu.pipeline_mode<synchronous>, transform_indices = @transform_1, window_bounds = array<i64: 32, 16>}, {pipeline_mode = #tpu.pipeline_mode<synchronous>, transform_indices = @transform_2, window_bounds = array<i64: 32, 1>}, {pipeline_mode = #tpu.pipeline_mode<synchronous>, transform_indices = @transform_3, window_bounds = array<i64: 32, 32>}, {pipeline_mode = #tpu.pipeline_mode<synchronous>, transform_indices = @transform_4, window_bounds = array<i64: 32, 1>}, {pipeline_mode = #tpu.pipeline_mode<synchronous>, transform_indices = @transform_5, window_bounds = array<i64: 32, 32>}, {pipeline_mode = #tpu.pipeline_mode<synchronous>, transform_indices = @transform_6, window_bounds = array<i64: 32, 1>}, {pipeline_mode = #tpu.pipeline_mode<synchronous>, transform_indices = @transform_7, window_bounds = array<i64: 8, 32>}, {pipeline_mode = #tpu.pipeline_mode<synchronous>, transform_indices = @transform_8, window_bounds = array<i64: 8, 1>}, {transform_indices = @transform_9, window_bounds = array<i64: 128, 8>}]} {
    %c0 = arith.constant 0 : index
    %c0_0 = arith.constant 0 : index
    %0 = vector.load %arg2[%c0, %c0_0] : memref<32x16xf32, #tpu.memory_space<vmem>>, vector<32x16xf32>
    %c0_1 = arith.constant 0 : index
    %c0_2 = arith.constant 0 : index
    %1 = vector.load %arg4[%c0_1, %c0_2] : memref<32x32xf32, #tpu.memory_space<vmem>>, vector<32x32xf32>
    %c0_3 = arith.constant 0 : index
    %c0_4 = arith.constant 0 : index
    %2 = vector.load %arg6[%c0_3, %c0_4] : memref<32x32xf32, #tpu.memory_space<vmem>>, vector<32x32xf32>
    %c0_5 = arith.constant 0 : index
    %c0_6 = arith.constant 0 : index
    %3 = vector.load %arg8[%c0_5, %c0_6] : memref<8x32xf32, #tpu.memory_space<vmem>>, vector<8x32xf32>
    %c0_7 = arith.constant 0 : index
    %c0_8 = arith.constant 0 : index
    %4 = vector.load %arg3[%c0_7, %c0_8] : memref<32x1xf32, #tpu.memory_space<vmem>>, vector<32x1xf32>
    %c0_9 = arith.constant 0 : index
    %c0_10 = arith.constant 0 : index
    %5 = vector.load %arg5[%c0_9, %c0_10] : memref<32x1xf32, #tpu.memory_space<vmem>>, vector<32x1xf32>
    %c0_11 = arith.constant 0 : index
    %c0_12 = arith.constant 0 : index
    %6 = vector.load %arg7[%c0_11, %c0_12] : memref<32x1xf32, #tpu.memory_space<vmem>>, vector<32x1xf32>
    %c0_13 = arith.constant 0 : index
    %c0_14 = arith.constant 0 : index
    %7 = vector.load %arg9[%c0_13, %c0_14] : memref<8x1xf32, #tpu.memory_space<vmem>>, vector<8x1xf32>
    %c0_i32 = arith.constant 0 : i32
    %c128_i32 = arith.constant 128 : i32
    %8 = arith.muli %c0_i32, %c128_i32 : i32
    %9 = tpu.assume_multiple %8, 128 : i32
    %10 = arith.index_cast %9 : i32 to index
    %c0_15 = arith.constant 0 : index
    %11 = vector.load %arg1[%10, %c0_15] : memref<128x16xf32, #tpu.memory_space<vmem>>, vector<128x16xf32>
    %cst = arith.constant dense<0.000000e+00> : vector<32x128xf32>
    %12 = tpu.matmul %0, %11, %cst {dimension_numbers = #tpu.dot_dimension_numbers<[1], [1], [0], [0], [0, 0, 1, 0], [], []>} : vector<32x16xf32>, vector<128x16xf32>, vector<32x128xf32> -> vector<32x128xf32>
    %13 = vector.broadcast %4 : vector<32x1xf32> to vector<32x128xf32>
    %14 = arith.addf %12, %13 : vector<32x128xf32>
    %cst_16 = arith.constant 0.000000e+00 : f32
    %15 = vector.broadcast %cst_16 : f32 to vector<32x128xf32>
    %16 = arith.maximumf %14, %15 : vector<32x128xf32>
    %17 = math.absf %14 : vector<32x128xf32>
    %cst_17 = arith.constant 0.000000e+00 : f32
    %18 = vector.broadcast %cst_17 : f32 to vector<32x128xf32>
    %19 = arith.subf %18, %17 : vector<32x128xf32>
    %20 = math.exp %19 : vector<32x128xf32>
    %21 = math.log1p %20 : vector<32x128xf32>
    %22 = arith.addf %16, %21 : vector<32x128xf32>
    %cst_18 = arith.constant dense<0.000000e+00> : vector<32x128xf32>
    %23 = tpu.matmul %1, %22, %cst_18 {dimension_numbers = #tpu.dot_dimension_numbers<[1], [0], [0], [1], [0, 0, 1, 1], [], []>} : vector<32x32xf32>, vector<32x128xf32>, vector<32x128xf32> -> vector<32x128xf32>
    %24 = vector.broadcast %5 : vector<32x1xf32> to vector<32x128xf32>
    %25 = arith.addf %23, %24 : vector<32x128xf32>
    %cst_19 = arith.constant 0.000000e+00 : f32
    %26 = vector.broadcast %cst_19 : f32 to vector<32x128xf32>
    %27 = arith.maximumf %25, %26 : vector<32x128xf32>
    %28 = math.absf %25 : vector<32x128xf32>
    %cst_20 = arith.constant 0.000000e+00 : f32
    %29 = vector.broadcast %cst_20 : f32 to vector<32x128xf32>
    %30 = arith.subf %29, %28 : vector<32x128xf32>
    %31 = math.exp %30 : vector<32x128xf32>
    %32 = math.log1p %31 : vector<32x128xf32>
    %33 = arith.addf %27, %32 : vector<32x128xf32>
    %cst_21 = arith.constant dense<0.000000e+00> : vector<32x128xf32>
    %34 = tpu.matmul %2, %33, %cst_21 {dimension_numbers = #tpu.dot_dimension_numbers<[1], [0], [0], [1], [0, 0, 1, 1], [], []>} : vector<32x32xf32>, vector<32x128xf32>, vector<32x128xf32> -> vector<32x128xf32>
    %35 = vector.broadcast %6 : vector<32x1xf32> to vector<32x128xf32>
    %36 = arith.addf %34, %35 : vector<32x128xf32>
    %cst_22 = arith.constant 0.000000e+00 : f32
    %37 = vector.broadcast %cst_22 : f32 to vector<32x128xf32>
    %38 = arith.maximumf %36, %37 : vector<32x128xf32>
    %39 = math.absf %36 : vector<32x128xf32>
    %cst_23 = arith.constant 0.000000e+00 : f32
    %40 = vector.broadcast %cst_23 : f32 to vector<32x128xf32>
    %41 = arith.subf %40, %39 : vector<32x128xf32>
    %42 = math.exp %41 : vector<32x128xf32>
    %43 = math.log1p %42 : vector<32x128xf32>
    %44 = arith.addf %38, %43 : vector<32x128xf32>
    %cst_24 = arith.constant dense<0.000000e+00> : vector<8x128xf32>
    %45 = tpu.matmul %3, %44, %cst_24 {dimension_numbers = #tpu.dot_dimension_numbers<[1], [0], [0], [1], [0, 0, 1, 1], [], []>} : vector<8x32xf32>, vector<32x128xf32>, vector<8x128xf32> -> vector<8x128xf32>
    %46 = vector.broadcast %7 : vector<8x1xf32> to vector<8x128xf32>
    %47 = arith.addf %45, %46 : vector<8x128xf32>
    %48 = tpu.transpose %47, [1, 0] : vector<8x128xf32> -> vector<128x8xf32>
    %49 = arith.index_cast %9 : i32 to index
    %c0_25 = arith.constant 0 : index
    %50 = vector.load %arg10[%49, %c0_25] : memref<128x8xf32, #tpu.memory_space<vmem>>, vector<128x8xf32>
    tpu.vector_store %arg10[%49, %c0_25], %48 {strides = array<i32>} : memref<128x8xf32, #tpu.memory_space<vmem>>, vector<128x8xf32>,
    %c1_i32 = arith.constant 1 : i32
    return
  }
  func.func @transform_0(%arg0: i32) -> (i32, i32) {
    %c0_i32 = arith.constant 0 : i32
    %c0_i32_0 = arith.constant 0 : i32
    return %arg0, %c0_i32 : i32, i32
  }
  func.func @transform_1(%arg0: i32) -> (i32, i32) {
    %c0_i32 = arith.constant 0 : i32
    %c0_i32_0 = arith.constant 0 : i32
    %c0_i32_1 = arith.constant 0 : i32
    return %c0_i32, %c0_i32_0 : i32, i32
  }
  func.func @transform_2(%arg0: i32) -> (i32, i32) {
    %c0_i32 = arith.constant 0 : i32
    %c0_i32_0 = arith.constant 0 : i32
    %c0_i32_1 = arith.constant 0 : i32
    return %c0_i32, %c0_i32_0 : i32, i32
  }
  func.func @transform_3(%arg0: i32) -> (i32, i32) {
    %c0_i32 = arith.constant 0 : i32
    %c0_i32_0 = arith.constant 0 : i32
    %c0_i32_1 = arith.constant 0 : i32
    return %c0_i32, %c0_i32_0 : i32, i32
  }
  func.func @transform_4(%arg0: i32) -> (i32, i32) {
    %c0_i32 = arith.constant 0 : i32
    %c0_i32_0 = arith.constant 0 : i32
    %c0_i32_1 = arith.constant 0 : i32
    return %c0_i32, %c0_i32_0 : i32, i32
  }
  func.func @transform_5(%arg0: i32) -> (i32, i32) {
    %c0_i32 = arith.constant 0 : i32
    %c0_i32_0 = arith.constant 0 : i32
    %c0_i32_1 = arith.constant 0 : i32
    return %c0_i32, %c0_i32_0 : i32, i32
  }
  func.func @transform_6(%arg0: i32) -> (i32, i32) {
    %c0_i32 = arith.constant 0 : i32
    %c0_i32_0 = arith.constant 0 : i32
    %c0_i32_1 = arith.constant 0 : i32
    return %c0_i32, %c0_i32_0 : i32, i32
  }
  func.func @transform_7(%arg0: i32) -> (i32, i32) {
    %c0_i32 = arith.constant 0 : i32
    %c0_i32_0 = arith.constant 0 : i32
    %c0_i32_1 = arith.constant 0 : i32
    return %c0_i32, %c0_i32_0 : i32, i32
  }
  func.func @transform_8(%arg0: i32) -> (i32, i32) {
    %c0_i32 = arith.constant 0 : i32
    %c0_i32_0 = arith.constant 0 : i32
    %c0_i32_1 = arith.constant 0 : i32
    return %c0_i32, %c0_i32_0 : i32, i32
  }
  func.func @transform_9(%arg0: i32) -> (i32, i32) {
    %c0_i32 = arith.constant 0 : i32
    %c0_i32_0 = arith.constant 0 : i32
    return %arg0, %c0_i32 : i32, i32
  }
}

</mosaic_0001>

<bundles_post_ra>
// kernel: model_latent_f.1
= control target key start
LH: loop header
LB: loop body
LE: loop exit
PB: predicated region body
PF: predicated region fallthrough
CT: control target
= control target key end

     0   :  { %s1907_s30 = smov 0   ;;  %s1909_s10 = smov 0   ;;  %s2264_s0 = inlined_call_operand.vmem [shape: f32[200,16], index: 0, kind: input, shape index: {}]   ;;  %s2265_s1 = inlined_call_operand.vmem [shape: f32[32,16], index: 1, kind: input, shape index: {}]   ;;  %s2266_s2 = inlined_call_operand.vmem [shape: f32[32,1], index: 2, kind: input, shape index: {}]   ;;  %s2267_s3 = inlined_call_operand.vmem [shape: f32[32,32], index: 3, kind: input, shape index: {}]   ;;  %s2268_s4 = inlined_call_operand.vmem [shape: f32[32,1], index: 4, kind: input, shape index: {}]   ;;  %s2269_s5 = inlined_call_operand.vmem [shape: f32[32,32], index: 5, kind: input, shape index: {}]   ;;  %s2270_s6 = inlined_call_operand.vmem [shape: f32[32,1], index: 6, kind: input, shape index: {}]   ;;  %s2271_s7 = inlined_call_operand.vmem [shape: f32[8,32], index: 7, kind: input, shape index: {}]   ;;  %s2272_s8 = inlined_call_operand.vmem [shape: f32[8,1], index: 8, kind: input, shape index: {}]   ;;  %s2273_s9 = inlined_call_operand.vmem [shape: f32[200,8], index: 9, kind: output, shape index: {}]  }
   0x1   :  { %s1911_s11 = smov 0  }
   0x2 LB: > { %s1920_s12 = sadd.s32 4294967295, %s1819_s11   ;;  %s1922_s13 = sadd.s32 1, %s1819_s11   ;;  %s1819_s11 = sphi %s1911_s11, %s2282_s11   ;;  %s1815_s10 = sphi %s1909_s10, %s2281_s10   ;;  %s1811_s30 = sphi %s1907_s30, %s2280_s30  }
   0x3   : > { %s217_s14 = ssub.s32 %s1819_s11, %s1922_s13  ;;  %s220_s15 = sadd.s32 1, %s1815_s10 }
   0x4   : > { %p218_p0 = scmp.eq.s32.totalorder %s217_s14, 0  ;;  %p230_p1 = scmp.ne.s32.totalorder %s1815_s10, %s1811_s30 }
   0x5   : > { %p231_p2 = scmp.eq.s32.totalorder %s1920_s12, 1  ;;  %p1382_p3 = scmp.ge.s32.totalorder %s1819_s11, 1 }
   0x6   : > { %s1930_s16 = scalar_select %p218_p0, %s1815_s10, %s220_s15  }
   0x7   : > { %p1932_p4 = por %p231_p2, %p230_p1  ;;  %p296_p5 = scmp.lt.s32.totalorder %s1819_s11, 3 }
   0x9   : > { %p297_p6 = pnand %p1382_p3, %p296_p5 }
   0xa   : > { %s1937_s18 = sshll.u32 (!%p297_p6), %s1920_s12, 4  ;;  %vm416_vm0 = vcmask (!%p297_p6), 130048   ;;  %v354_v0 = vld [vmem:[%s2265_s1] sm:$0xff] (!%p297_p6)  ;;  %v1853_v1 = vmov (!%p297_p6), 0   ;;  %v369_v3 = vld [vmem:[%s2266_s2 + $0x10] sm:$0xff] (!%p297_p6)  ;;  %v368_v4 = vld [vmem:[%s2266_s2 + $0x8] sm:$0xff] (!%p297_p6) }
   0xb   : > { %300 = sbr.rel (%p297_p6) target bundleno = 1321 (0x529), region = 56  ;;  %p340_p7 = scmp.lt.s32.totalorder (!%p297_p6), %s1937_s18, 24  ;;  %1508 = vmatprep.mubr.msk.f32.mxu0 (!%p297_p6), %vm416_vm0, %v354_v0  ;;  %1715 = vset.pattern.permute.xlu0 (!%p297_p6), %v1853_v1  ;;  %v367_v2 = vld [vmem:[%s2266_s2] sm:$0xff] (!%p297_p6)  ;;  %v370_v5 = vld [vmem:[%s2266_s2 + $0x18] sm:$0xff] (!%p297_p6)  ;;  %vm1964_vm1 = vmpackc.low (!%p297_p6), %vm416_vm0, %vm416_vm0  ;;  %vm642_vm2 = vcmask (!%p297_p6), 261120   ;;  %vm1855_vm11 = vmmov (!%p297_p6), 0  }
   0xc   : > { %398 = vperm.xlu0 (!%p297_p6), %1715, %v367_v2   ;;  %1716 = vset.pattern.permute.xlu1 (!%p297_p6), %v1853_v1  ;;  %v371_v7 = vld [vmem:[%s2268_s4] sm:$0xff] (!%p297_p6)  ;;  %v372_v13 = vld [vmem:[%s2268_s4 + $0x8] sm:$0xff] (!%p297_p6)  ;;  %v373_v15 = vld [vmem:[%s2268_s4 + $0x10] sm:$0xff] (!%p297_p6)  ;;  %s332_s21 = sand.u32 (!%p297_p6), 1, %s1811_s30  }
   0xd   : > { %408 = vperm.xlu1 (!%p297_p6), %1716, %v369_v3   ;;  %v374_v16 = vld [vmem:[%s2268_s4 + $0x18] sm:$0xff] (!%p297_p6)  ;;  %v375_v19 = vld [vmem:[%s2270_s6] sm:$0xff] (!%p297_p6)  ;;  %v376_v21 = vld [vmem:[%s2270_s6 + $0x8] sm:$0xff] (!%p297_p6)  ;;  %s1383_s22 = sshll.u32 (!%p297_p6), %s332_s21, 7 }
   0xe   : > { %v377_v22 = vld [vmem:[%s2270_s6 + $0x10] sm:$0xff] (!%p297_p6)  ;;  %v378_v23 = vld [vmem:[%s2270_s6 + $0x18] sm:$0xff] (!%p297_p6)  ;;  %v379_v26 = vld [vmem:[%s2272_s8] sm:$0xff] (!%p297_p6)  ;;  %s2130_s23 = scalar_lea.vmem (!%p297_p6), [#allocation2], %s1383_s22  }
   0xf   : > { %v355_v40 = vld [vmem:[%s2265_s1 + $0x8] sm:$0xff] (!%p297_p6)  ;;  %v356_v41 = vld [vmem:[%s2265_s1 + $0x10] sm:$0xff] (!%p297_p6)  ;;  %v357_v42 = vld [vmem:[%s2265_s1 + $0x18] sm:$0xff] (!%p297_p6) }
  0x10   : > { %403 = vperm.xlu0 (!%p297_p6), %1715, %v368_v4   ;;  %v358_v43 = vld [vmem:[%s2267_s3] sm:$0xff] (!%p297_p6) }
  0x11   : > { %413 = vperm.xlu1 (!%p297_p6), %1716, %v370_v5   ;;  %1522 = vmatprep.mubr.msk.f32.mxu1 (!%p297_p6), %vm642_vm2, %v358_v43 }
  0x12   : > { %s341_s25 = scalar_select %p340_p7, %s1937_s18, 24 }
  0x13   : > { %s1112_s30 = ssub.s32 (%p1932_p4), 25, %s1937_s18  ;;  %s1432_s24 = sshll.u32 (%p1932_p4), %s1920_s12, 7 }
  0x14   : > { %s1385_s11 = sshll.u32 %s341_s25, 3  ;;  %624 = vperm.xlu0 %1715, %v371_v7   ;;  %p1113_p8 = scmp.lt.s32.totalorder (%p1932_p4), %s1112_s30, 16 }
  0x15   : > { %s1960_s19 = scalar_lea.vmem %s2264_s0, %s1385_s11  ;;  %629 = vperm.xlu1 %1716, %v372_v13   ;;  %s2171_s27 = scalar_lea.vmem (%p1932_p4), %s2273_s9, %s1432_s24  }
  0x16   : > { %v380_v8 = vld [vmem:[%s1960_s19] sm:$0xff]  ;;  %v381_v9 = vld [vmem:[%s1960_s19 + $0x8] sm:$0xff]  ;;  %v382_v10 = vld [vmem:[%s1960_s19 + $0x10] sm:$0xff] }
  0x17   : > { %v1553_v11 = vpack.c.bf16 %v381_v9, %v380_v8  ;;  %v383_v12 = vld [vmem:[%s1960_s19 + $0x18] sm:$0xff]  ;;  %v384_v17 = vld [vmem:[%s1960_s19 + $0x20] sm:$0xff]  ;;  %v385_v18 = vld [vmem:[%s1960_s19 + $0x28] sm:$0xff] }
  0x18   : > { %v1559_v14 = vpack.c.bf16 %v383_v12, %v382_v10  ;;  %634 = vperm.xlu0 %1715, %v373_v15   ;;  %v1565_v20 = vpack.c.bf16 %v385_v18, %v384_v17  ;;  %v386_v24 = vld [vmem:[%s1960_s19 + $0x30] sm:$0xff]  ;;  %v387_v25 = vld [vmem:[%s1960_s19 + $0x38] sm:$0xff]  ;;  %v388_v28 = vld [vmem:[%s1960_s19 + $0x40] sm:$0xff] }
  0x19   : > { %1555 = vmatprep.subr.msk.bf16.mxu0 %vm1964_vm1, %v1553_v11  ;;  %639 = vperm.xlu1 %1716, %v374_v16   ;;  %v1571_v27 = vpack.c.bf16 %v387_v25, %v386_v24  ;;  %v389_v29 = vld [vmem:[%s1960_s19 + $0x48] sm:$0xff]  ;;  %v390_v31 = vld [vmem:[%s1960_s19 + $0x50] sm:$0xff]  ;;  %v391_v32 = vld [vmem:[%s1960_s19 + $0x58] sm:$0xff] }
  0x1a   : > { %1558 = vmatpush3.bf16.xpose.msk.msra.mxu0 %vm1964_vm1, %v1553_v11  ;;  %v1577_v30 = vpack.c.bf16 %v389_v29, %v388_v28  ;;  %v1583_v33 = vpack.c.bf16 %v391_v32, %v390_v31  ;;  %v392_v34 = vld [vmem:[%s1960_s19 + $0x60] sm:$0xff]  ;;  %v393_v35 = vld [vmem:[%s1960_s19 + $0x68] sm:$0xff]  ;;  %v394_v37 = vld [vmem:[%s1960_s19 + $0x70] sm:$0xff] }
  0x1b   : > { %1561 = vmatprep.subr.msk.bf16.mxu0 %vm1964_vm1, %v1559_v14  ;;  %v1589_v36 = vpack.c.bf16 %v393_v35, %v392_v34  ;;  %v395_v38 = vld [vmem:[%s1960_s19 + $0x78] sm:$0xff] }
  0x1c   : > { %802 = vperm.xlu0 %1715, %v375_v19   ;;  %v1595_v39 = vpack.c.bf16 %v395_v38, %v394_v37 }
  0x1d   : > { %807 = vperm.xlu1 %1716, %v376_v21  }
  0x20   : > { %812 = vperm.xlu0 %1715, %v377_v22  }
  0x21   : > { %817 = vperm.xlu1 %1716, %v378_v23  }
  0x22   : > { %1564 = vmatpush3.bf16.xpose.msk.msra.mxu0 %vm1964_vm1, %v1559_v14 }
  0x23   : > { %1567 = vmatprep.subr.msk.bf16.mxu0 %vm1964_vm1, %v1565_v20 }
  0x24   : > { %979 = vperm.xlu0 %1715, %v379_v26  }
  0x2a   : > { %1570 = vmatpush3.bf16.xpose.msk.msra.mxu0 %vm1964_vm1, %v1565_v20 }
  0x2b   : > { %1573 = vmatprep.subr.msk.bf16.mxu0 %vm1964_vm1, %v1571_v27 }
  0x32   : > { %1576 = vmatpush3.bf16.xpose.msk.msra.mxu0 %vm1964_vm1, %v1571_v27 }
  0x33   : > { %1579 = vmatprep.subr.msk.bf16.mxu0 %vm1964_vm1, %v1577_v30 }
  0x3a   : > { %1582 = vmatpush3.bf16.xpose.msk.msra.mxu0 %vm1964_vm1, %v1577_v30 }
  0x3b   : > { %1585 = vmatprep.subr.msk.bf16.mxu0 %vm1964_vm1, %v1583_v33 }
  0x42   : > { %1588 = vmatpush3.bf16.xpose.msk.msra.mxu0 %vm1964_vm1, %v1583_v33 }
  0x43   : > { %1591 = vmatprep.subr.msk.bf16.mxu0 %vm1964_vm1, %v1589_v36 }
  0x4a   : > { %1594 = vmatpush3.bf16.xpose.msk.msra.mxu0 %vm1964_vm1, %v1589_v36 }
  0x4b   : > { %1597 = vmatprep.subr.msk.bf16.mxu0 %vm1964_vm1, %v1595_v39 }
  0x52   : > { %1600 = vmatpush3.bf16.xpose.msk.msra.mxu0 %vm1964_vm1, %v1595_v39 }
  0x59   : > { %1509 = vmatmul.mubr.msk.f32.vlgmr.msra.gmra.mrb[0].mxu0 %vm416_vm0, %v355_v40 }
  0x5a   : > { %1511 = vmatprep.mubr.msk.f32.mxu0 %vm416_vm0, %v356_v41 }
  0x5d   : > { %1512 = vmatmul.mubr.msk.f32.gmra.mrb[2].mxu0 %vm416_vm0, %v357_v42  ;;  %vm1087_vm0 = vcmask 64512  }
  0x8b   : > { %v399_v44 = vpop.permute.xlu0 %398 }
  0x8c   : > { %v409_v45 = vpop.permute.xlu1 %408 }
  0x8f   : > { %v404_v46 = vpop.permute.xlu0 %403 }
  0x90   : > { %v414_v52 = vpop.permute.xlu1 %413 }
 0x12c   : > { %v1510_v47 = vpop.f32.mrb[0].mxu0 }
 0x12d   : > { %v549_v48 = vadd.f32 %v1510_v47, %v404_v46  ;;  %v543_v49 = vpop.f32.mrb[1].mxu0 }
 0x12e   : > { %v2059_v50 = vadd.f32 %v543_v49, %v399_v44 }
 0x12f   : > { %v567_v51 = vand.u32 2147483647, %v549_v48  ;;  %v563_v21 = vmax.f32 %v549_v48, 0.0 }
 0x130   : > { %v566_v53 = vand.u32 2147483647, %v2059_v50  ;;  %v1513_v54 = vpop.f32.mrb[2].mxu0  ;;  %v562_v30 = vmax.f32 %v2059_v50, 0.0  ;;  %v359_v50 = vld [vmem:[%s2267_s3 + $0x8] sm:$0xff] }
 0x131   : > { %v571_v55 = vsub.f32 0.0, %v567_v51  ;;  %v2062_v56 = vadd.f32 %v1513_v54, %v414_v52  ;;  %v553_v57 = vpop.f32.mrb[3].mxu0  ;;  %v360_v51 = vld [vmem:[%s2267_s3 + $0x10] sm:$0xff]  ;;  %v361_v52 = vld [vmem:[%s2267_s3 + $0x18] sm:$0xff]  ;;  %v630_v54 = vpop.permute.xlu1 %629 }
 0x132   : > { %v570_v58 = vsub.f32 0.0, %v566_v53  ;;  %v2064_v59 = vadd.f32 %v553_v57, %v409_v45  ;;  %v362_v53 = vld [vmem:[%s2269_s5] sm:$0xff] }
 0x133   : > { %v576_v60 = vmul.f32 1.442695, %v571_v55  ;;  %v569_v61 = vand.u32 2147483647, %v2062_v56  ;;  %v565_v40 = vmax.f32 %v2062_v56, 0.0  ;;  %v625_v55 = vpop.permute.xlu0 %624 }
 0x134   : > { %v574_v62 = vmul.f32 1.442695, %v570_v58  ;;  %v568_v63 = vand.u32 2147483647, %v2064_v59  ;;  %v564_v44 = vmax.f32 %v2064_v59, 0.0 }
 0x135   : > { %1717 = vpow2.f32 %v576_v60  ;;  %v573_v0 = vsub.f32 0.0, %v569_v61  ;;  %v640_v61 = vpop.permute.xlu1 %639 }
 0x136   : > { %1719 = vpow2.f32 %v574_v62  ;;  %v572_v1 = vsub.f32 0.0, %v568_v63 }
 0x137   : > { %v580_v2 = vmul.f32 1.442695, %v573_v0  ;;  %v635_v0 = vpop.permute.xlu0 %634 }
 0x138   : > { %v578_v3 = vmul.f32 1.442695, %v572_v1 }
 0x139   : > { %1721 = vpow2.f32 %v580_v2 }
 0x13a   : > { %1723 = vpow2.f32 %v578_v3 }
 0x13f   : > { %v1718_v4 = vpop.eup %1717 }
 0x140   : > { %v1720_v5 = vpop.eup %1719  ;;  %v591_v6 = vadd.f32 1.0, %v1718_v4  ;;  %v594_v12 = vmul.f32 -0.5, %v1718_v4  ;;  %v597_v16 = vand.u32 2147483647, %v1718_v4 }
 0x141   : > { %v582_v7 = vadd.f32 1.0, %v1720_v5  ;;  %v585_v13 = vmul.f32 -0.5, %v1720_v5  ;;  %v588_v19 = vand.u32 2147483647, %v1720_v5 }
 0x142   : > { %1725 = vlog2.f32 %v591_v6  ;;  %v595_v15 = vadd.f32 1.0, %v594_v12  ;;  %vm598_vm3 = vcmp.lt.f32.partialorder %v597_v16, 0.0004427343 }
 0x143   : > { %v1722_v8 = vpop.eup %1721  ;;  %1727 = vlog2.f32 %v582_v7  ;;  %v586_v18 = vadd.f32 1.0, %v585_v13  ;;  %vm589_vm4 = vcmp.lt.f32.partialorder %v588_v19, 0.0004427343 }
 0x144   : > { %v1724_v9 = vpop.eup %1723  ;;  %v609_v10 = vadd.f32 1.0, %v1722_v8  ;;  %v612_v14 = vmul.f32 -0.5, %v1722_v8  ;;  %v596_v25 = vmul.f32 %v1718_v4, %v595_v15  ;;  %v615_v26 = vand.u32 2147483647, %v1722_v8 }
 0x145   : > { %v600_v11 = vadd.f32 1.0, %v1724_v9  ;;  %v603_v17 = vmul.f32 -0.5, %v1724_v9  ;;  %v587_v29 = vmul.f32 %v1720_v5, %v586_v18  ;;  %v606_v31 = vand.u32 2147483647, %v1724_v9 }
 0x146   : > { %1729 = vlog2.f32 %v609_v10  ;;  %v613_v23 = vadd.f32 1.0, %v612_v14  ;;  %vm616_vm5 = vcmp.lt.f32.partialorder %v615_v26, 0.0004427343 }
 0x147   : > { %1731 = vlog2.f32 %v600_v11  ;;  %v604_v27 = vadd.f32 1.0, %v603_v17  ;;  %vm607_vm6 = vcmp.lt.f32.partialorder %v606_v31, 0.0004427343 }
 0x148   : > { %v614_v38 = vmul.f32 %v1722_v8, %v613_v23 }
 0x149   : > { %v605_v42 = vmul.f32 %v1724_v9, %v604_v27 }
 0x14c   : > { %v1726_v20 = vpop.eup %1725 }
 0x14d   : > { %v1728_v22 = vpop.eup %1727  ;;  %v593_v24 = vmul.f32 0.6931472, %v1726_v20 }
 0x14e   : > { %v584_v28 = vmul.f32 0.6931472, %v1728_v22 }
 0x14f   : > { %v599_v32 = vsel %vm598_vm3, %v596_v25, %v593_v24 }
 0x150   : > { %v1730_v33 = vpop.eup %1729  ;;  %v590_v34 = vsel %vm589_vm4, %v587_v29, %v584_v28  ;;  %v619_v35 = vadd.f32 %v599_v32, %v563_v21 }
 0x151   : > { %v1732_v36 = vpop.eup %1731  ;;  %v611_v37 = vmul.f32 0.6931472, %v1730_v33  ;;  %v618_v39 = vadd.f32 %v590_v34, %v562_v30 }
 0x152   : > { %v602_v41 = vmul.f32 0.6931472, %v1732_v36 }
 0x153   : > { %v617_v43 = vsel %vm616_vm5, %v614_v38, %v611_v37  ;;  %v1601_v45 = vpack.c.bf16 %v619_v35, %v618_v39 }
 0x154   : > { %v621_v46 = vadd.f32 %v617_v43, %v565_v40  ;;  %v608_v47 = vsel %vm607_vm6, %v605_v42, %v602_v41 }
 0x155   : > { %v620_v48 = vadd.f32 %v608_v47, %v564_v44  ;;  %1602 = vmatprep.subr.bf16.mxu1 %v1601_v45 }
 0x156   : > { %1604 = vmatpush3.bf16.msra.mxu1 %v1601_v45 }
 0x157   : > { %v1605_v49 = vpack.c.bf16 %v621_v46, %v620_v48 }
 0x159   : > { %1606 = vmatprep.subr.bf16.mxu1 %v1605_v49 }
 0x15a   : > { %1608 = vmatpush3.bf16.msra.mxu1 %v1605_v49 }
 0x15d   : > { %1523 = vmatmul.mubr.msk.f32.vlgmr.msra.gmra.mrb[0].mxu1 %vm642_vm2, %v359_v50 }
 0x15e   : > { %1525 = vmatprep.mubr.msk.f32.mxu1 %vm642_vm2, %v360_v51 }
 0x161   : > { %1526 = vmatmul.mubr.msk.f32.gmra.mrb[2].mxu1 %vm642_vm2, %v361_v52 }
 0x162   : > { %1536 = vmatprep.mubr.msk.f32.mxu1 %vm642_vm2, %v362_v53 }
 0x230   : > { %v1524_v56 = vpop.f32.mrb[0].mxu1 }
 0x231   : > { %v727_v57 = vadd.f32 %v1524_v56, %v630_v54  ;;  %v721_v58 = vpop.f32.mrb[1].mxu1 }
 0x232   : > { %v2087_v59 = vadd.f32 %v721_v58, %v625_v55 }
 0x233   : > { %v745_v60 = vand.u32 2147483647, %v727_v57  ;;  %v741_v31 = vmax.f32 %v727_v57, 0.0 }
 0x234   : > { %v744_v62 = vand.u32 2147483647, %v2087_v59  ;;  %v1527_v63 = vpop.f32.mrb[2].mxu1  ;;  %v740_v41 = vmax.f32 %v2087_v59, 0.0 }
 0x235   : > { %v749_v1 = vsub.f32 0.0, %v745_v60  ;;  %v2090_v2 = vadd.f32 %v1527_v63, %v640_v61  ;;  %v731_v3 = vpop.f32.mrb[3].mxu1  ;;  %v363_v60 = vld [vmem:[%s2269_s5 + $0x8] sm:$0xff]  ;;  %v364_v61 = vld [vmem:[%s2269_s5 + $0x10] sm:$0xff]  ;;  %v1854_v63 = vmov 0.0|0.0  }
 0x236   : > { %v748_v4 = vsub.f32 0.0, %v744_v62  ;;  %v2092_v5 = vadd.f32 %v731_v3, %v635_v0  ;;  %v365_v62 = vld [vmem:[%s2269_s5 + $0x18] sm:$0xff]  ;;  %v1856_v0 = vmov 0.0  }
 0x237   : > { %v754_v6 = vmul.f32 1.442695, %v749_v1  ;;  %v747_v7 = vand.u32 2147483647, %v2090_v2  ;;  %v743_v50 = vmax.f32 %v2090_v2, 0.0  ;;  %v808_v1 = vpop.permute.xlu1 %807  ;;  %v803_v2 = vpop.permute.xlu0 %802 }
 0x238   : > { %v752_v8 = vmul.f32 1.442695, %v748_v4  ;;  %v746_v9 = vand.u32 2147483647, %v2092_v5  ;;  %v742_v54 = vmax.f32 %v2092_v5, 0.0 }
 0x239   : > { %1733 = vpow2.f32 %v754_v6  ;;  %v751_v10 = vsub.f32 0.0, %v747_v7 }
 0x23a   : > { %1735 = vpow2.f32 %v752_v8  ;;  %v750_v11 = vsub.f32 0.0, %v746_v9 }
 0x23b   : > { %v758_v12 = vmul.f32 1.442695, %v751_v10  ;;  %v818_v8 = vpop.permute.xlu1 %817 }
 0x23c   : > { %v756_v13 = vmul.f32 1.442695, %v750_v11  ;;  %v813_v11 = vpop.permute.xlu0 %812 }
 0x23d   : > { %1737 = vpow2.f32 %v758_v12 }
 0x23e   : > { %1739 = vpow2.f32 %v756_v13 }
 0x243   : > { %v1734_v14 = vpop.eup %1733 }
 0x244   : > { %v1736_v15 = vpop.eup %1735  ;;  %v769_v16 = vadd.f32 1.0, %v1734_v14  ;;  %v772_v21 = vmul.f32 -0.5, %v1734_v14  ;;  %v775_v25 = vand.u32 2147483647, %v1734_v14 }
 0x245   : > { %v760_v17 = vadd.f32 1.0, %v1736_v15  ;;  %v763_v23 = vmul.f32 -0.5, %v1736_v15  ;;  %v766_v29 = vand.u32 2147483647, %v1736_v15 }
 0x246   : > { %1741 = vlog2.f32 %v769_v16  ;;  %v773_v24 = vadd.f32 1.0, %v772_v21  ;;  %vm776_vm7 = vcmp.lt.f32.partialorder %v775_v25, 0.0004427343 }
 0x247   : > { %v1738_v18 = vpop.eup %1737  ;;  %1743 = vlog2.f32 %v760_v17  ;;  %v764_v27 = vadd.f32 1.0, %v763_v23  ;;  %vm767_vm8 = vcmp.lt.f32.partialorder %v766_v29, 0.0004427343 }
 0x248   : > { %v1740_v19 = vpop.eup %1739  ;;  %v787_v20 = vadd.f32 1.0, %v1738_v18  ;;  %v790_v26 = vmul.f32 -0.5, %v1738_v18  ;;  %v774_v34 = vmul.f32 %v1734_v14, %v773_v24  ;;  %v793_v38 = vand.u32 2147483647, %v1738_v18 }
 0x249   : > { %v778_v22 = vadd.f32 1.0, %v1740_v19  ;;  %v781_v28 = vmul.f32 -0.5, %v1740_v19  ;;  %v765_v37 = vmul.f32 %v1736_v15, %v764_v27  ;;  %v784_v42 = vand.u32 2147483647, %v1740_v19 }
 0x24a   : > { %1745 = vlog2.f32 %v787_v20  ;;  %v791_v35 = vadd.f32 1.0, %v790_v26  ;;  %vm794_vm9 = vcmp.lt.f32.partialorder %v793_v38, 0.0004427343 }
 0x24b   : > { %1747 = vlog2.f32 %v778_v22  ;;  %v782_v39 = vadd.f32 1.0, %v781_v28  ;;  %vm785_vm10 = vcmp.lt.f32.partialorder %v784_v42, 0.0004427343 }
 0x24c   : > { %v792_v49 = vmul.f32 %v1738_v18, %v791_v35 }
 0x24d   : > { %v783_v52 = vmul.f32 %v1740_v19, %v782_v39 }
 0x250   : > { %v1742_v30 = vpop.eup %1741 }
 0x251   : > { %v1744_v32 = vpop.eup %1743  ;;  %v771_v33 = vmul.f32 0.6931472, %v1742_v30 }
 0x252   : > { %v762_v36 = vmul.f32 0.6931472, %v1744_v32 }
 0x253   : > { %v777_v40 = vsel %vm776_vm7, %v774_v34, %v771_v33 }
 0x254   : > { %v1746_v43 = vpop.eup %1745  ;;  %v797_v44 = vadd.f32 %v777_v40, %v741_v31  ;;  %v768_v45 = vsel %vm767_vm8, %v765_v37, %v762_v36 }
 0x255   : > { %v1748_v46 = vpop.eup %1747  ;;  %v796_v47 = vadd.f32 %v768_v45, %v740_v41  ;;  %v789_v48 = vmul.f32 0.6931472, %v1746_v43 }
 0x256   : > { %v780_v51 = vmul.f32 0.6931472, %v1748_v46 }
 0x257   : > { %v795_v53 = vsel %vm794_vm9, %v792_v49, %v789_v48  ;;  %v1609_v55 = vpack.c.bf16 %v797_v44, %v796_v47 }
 0x258   : > { %v799_v56 = vadd.f32 %v795_v53, %v743_v50  ;;  %v786_v57 = vsel %vm785_vm10, %v783_v52, %v780_v51 }
 0x259   : > { %v798_v58 = vadd.f32 %v786_v57, %v742_v54  ;;  %1610 = vmatprep.subr.bf16.mxu1 %v1609_v55 }
 0x25a   : > { %1612 = vmatpush3.bf16.msra.mxu1 %v1609_v55 }
 0x25b   : > { %v1613_v59 = vpack.c.bf16 %v799_v56, %v798_v58 }
 0x25d   : > { %1614 = vmatprep.subr.bf16.mxu1 %v1613_v59 }
 0x25e   : > { %1616 = vmatpush3.bf16.msra.mxu1 %v1613_v59 }
 0x25f   : > { %1617 = vmatprep.subr.bf16.mxu1 %v1854_v63 }
 0x261   : > { %1537 = vmatmul.mubr.msk.f32.vlgmr.msra.gmra.mrb[4].mxu1 %vm642_vm2, %v363_v60 }
 0x262   : > { %1539 = vmatprep.mubr.msk.f32.mxu1 %vm642_vm2, %v364_v61 }
 0x265   : > { %1540 = vmatmul.mubr.msk.f32.gmra.mrb[6].mxu1 %vm642_vm2, %v365_v62 }
 0x266   : > { %1550 = vmatprep.mubr.msk.f32.mxu1 %vm1855_vm11, %v1856_v0 }
 0x334   : > { %v1538_v3 = vpop.f32.mrb[4].mxu1 }
 0x335   : > { %v904_v4 = vadd.f32 %v1538_v3, %v808_v1  ;;  %v898_v5 = vpop.f32.mrb[5].mxu1 }
 0x336   : > { %v2112_v6 = vadd.f32 %v898_v5, %v803_v2 }
 0x337   : > { %v922_v7 = vand.u32 2147483647, %v904_v4  ;;  %v918_v42 = vmax.f32 %v904_v4, 0.0 }
 0x338   : > { %v921_v9 = vand.u32 2147483647, %v2112_v6  ;;  %v1541_v10 = vpop.f32.mrb[6].mxu1  ;;  %v917_v52 = vmax.f32 %v2112_v6, 0.0 }
 0x339   : > { %v926_v12 = vsub.f32 0.0, %v922_v7  ;;  %v2115_v13 = vadd.f32 %v1541_v10, %v818_v8  ;;  %v908_v14 = vpop.f32.mrb[7].mxu1  ;;  %v366_v8 = vld [vmem:[%s2271_s7] sm:$0xff] }
 0x33a   : > { %v925_v15 = vsub.f32 0.0, %v921_v9  ;;  %v2117_v16 = vadd.f32 %v908_v14, %v813_v11  ;;  %v980_v9 = vpop.permute.xlu0 %979 }
 0x33b   : > { %v931_v17 = vmul.f32 1.442695, %v926_v12  ;;  %v924_v18 = vand.u32 2147483647, %v2115_v13  ;;  %v920_v61 = vmax.f32 %v2115_v13, 0.0 }
 0x33c   : > { %v929_v19 = vmul.f32 1.442695, %v925_v15  ;;  %v923_v20 = vand.u32 2147483647, %v2117_v16  ;;  %v919_v3 = vmax.f32 %v2117_v16, 0.0 }
 0x33d   : > { %1749 = vpow2.f32 %v931_v17  ;;  %v928_v21 = vsub.f32 0.0, %v924_v18 }
 0x33e   : > { %1751 = vpow2.f32 %v929_v19  ;;  %v927_v22 = vsub.f32 0.0, %v923_v20 }
 0x33f   : > { %v935_v23 = vmul.f32 1.442695, %v928_v21 }
 0x340   : > { %v933_v24 = vmul.f32 1.442695, %v927_v22 }
 0x341   : > { %1753 = vpow2.f32 %v935_v23 }
 0x342   : > { %1755 = vpow2.f32 %v933_v24 }
 0x347   : > { %v1750_v25 = vpop.eup %1749 }
 0x348   : > { %v1752_v26 = vpop.eup %1751  ;;  %v946_v27 = vadd.f32 1.0, %v1750_v25  ;;  %v949_v32 = vmul.f32 -0.5, %v1750_v25  ;;  %v952_v36 = vand.u32 2147483647, %v1750_v25 }
 0x349   : > { %v937_v28 = vadd.f32 1.0, %v1752_v26  ;;  %v940_v34 = vmul.f32 -0.5, %v1752_v26  ;;  %v943_v40 = vand.u32 2147483647, %v1752_v26 }
 0x34a   : > { %1757 = vlog2.f32 %v946_v27  ;;  %v950_v35 = vadd.f32 1.0, %v949_v32  ;;  %vm953_vm12 = vcmp.lt.f32.partialorder %v952_v36, 0.0004427343 }
 0x34b   : > { %v1754_v29 = vpop.eup %1753  ;;  %1759 = vlog2.f32 %v937_v28  ;;  %v941_v38 = vadd.f32 1.0, %v940_v34  ;;  %vm944_vm13 = vcmp.lt.f32.partialorder %v943_v40, 0.0004427343 }
 0x34c   : > { %v1756_v30 = vpop.eup %1755  ;;  %v964_v31 = vadd.f32 1.0, %v1754_v29  ;;  %v967_v37 = vmul.f32 -0.5, %v1754_v29  ;;  %v951_v45 = vmul.f32 %v1750_v25, %v950_v35  ;;  %v970_v49 = vand.u32 2147483647, %v1754_v29 }
 0x34d   : > { %v955_v33 = vadd.f32 1.0, %v1756_v30  ;;  %v958_v39 = vmul.f32 -0.5, %v1756_v30  ;;  %v942_v48 = vmul.f32 %v1752_v26, %v941_v38  ;;  %v961_v53 = vand.u32 2147483647, %v1756_v30 }
 0x34e   : > { %1761 = vlog2.f32 %v964_v31  ;;  %v968_v46 = vadd.f32 1.0, %v967_v37  ;;  %vm971_vm14 = vcmp.lt.f32.partialorder %v970_v49, 0.0004427343 }
 0x34f   : > { %1763 = vlog2.f32 %v955_v33  ;;  %v959_v50 = vadd.f32 1.0, %v958_v39  ;;  %vm962_vm15 = vcmp.lt.f32.partialorder %v961_v53, 0.0004427343 }
 0x350   : > { %v969_v60 = vmul.f32 %v1754_v29, %v968_v46 }
 0x351   : > { %v960_v0 = vmul.f32 %v1756_v30, %v959_v50 }
 0x354   : > { %v1758_v41 = vpop.eup %1757 }
 0x355   : > { %v1760_v43 = vpop.eup %1759  ;;  %v948_v44 = vmul.f32 0.6931472, %v1758_v41 }
 0x356   : > { %v939_v47 = vmul.f32 0.6931472, %v1760_v43 }
 0x357   : > { %v954_v51 = vsel %vm953_vm12, %v951_v45, %v948_v44 }
 0x358   : > { %v1762_v54 = vpop.eup %1761  ;;  %v974_v55 = vadd.f32 %v954_v51, %v918_v42  ;;  %v945_v56 = vsel %vm944_vm13, %v942_v48, %v939_v47 }
 0x359   : > { %v1764_v57 = vpop.eup %1763  ;;  %v973_v58 = vadd.f32 %v945_v56, %v917_v52  ;;  %v966_v59 = vmul.f32 0.6931472, %v1762_v54 }
 0x35a   : > { %v957_v62 = vmul.f32 0.6931472, %v1764_v57 }
 0x35b   : > { %v1618_v1 = vpack.c.bf16 %v974_v55, %v973_v58  ;;  %v972_v2 = vsel %vm971_vm14, %v969_v60, %v966_v59 }
 0x35c   : > { %v976_v4 = vadd.f32 %v972_v2, %v920_v61  ;;  %v963_v5 = vsel %vm962_vm15, %v960_v0, %v957_v62 }
 0x35d   : > { %v975_v6 = vadd.f32 %v963_v5, %v919_v3  ;;  %1619 = vmatpush3.bf16.msra.mxu1 %v1618_v1 }
 0x35e   : > { %1620 = vmatprep.subr.bf16.mxu1 %v1854_v63 }
 0x35f   : > { %v1621_v7 = vpack.c.bf16 %v976_v4, %v975_v6 }
 0x361   : > { %1622 = vmatpush3.bf16.msra.mxu1 %v1621_v7 }
 0x364   : > { %1551 = vmatmul.mubr.msk.f32.vlgmr.msra.gmra.mrb[8].mxu1 %vm642_vm2, %v366_v8 }
 0x437   : > { %v1051_v10 = vpop.f32.mrb[8].mxu1 }
 0x438   : > { %v1052_v11 = vadd.f32 %v1051_v10, %v980_v9  ;;  %v1552_v12 = vpop.f32.mrb[9].mxu1 }
 0x43a   : > { %1055 = vxpose.xlu1.b32.start.end [1/1] (short) %v1052_v11, 128 }
 0x4ba   : > { %v1071_v13 = vpop.trf.xlu1 }
 0x4bb   : > { %1088 = vst.msk [vmem:[%s2130_s23] sm:$0xff] %vm1087_vm0, %v1071_v13 }
 0x4be   : > { %v1072_v63 = vpop.trf.xlu1 }
 0x4bf   : > { %1089 = vst.msk [vmem:[%s2130_s23 + $0x8] sm:$0xff] %vm1087_vm0, %v1072_v63 }
 0x4c2   : > { %v1073_v14 = vpop.trf.xlu1 }
 0x4c3   : > { %1090 = vst.msk [vmem:[%s2130_s23 + $0x10] sm:$0xff] %vm1087_vm0, %v1073_v14 }
 0x4c6   : > { %v1074_v15 = vpop.trf.xlu1 }
 0x4c7   : > { %1091 = vst.msk [vmem:[%s2130_s23 + $0x18] sm:$0xff] %vm1087_vm0, %v1074_v15 }
 0x4ca   : > { %v1075_v16 = vpop.trf.xlu1 }
 0x4cb   : > { %1092 = vst.msk [vmem:[%s2130_s23 + $0x20] sm:$0xff] %vm1087_vm0, %v1075_v16 }
 0x4ce   : > { %v1076_v17 = vpop.trf.xlu1 }
 0x4cf   : > { %1093 = vst.msk [vmem:[%s2130_s23 + $0x28] sm:$0xff] %vm1087_vm0, %v1076_v17 }
 0x4d2   : > { %v1077_v18 = vpop.trf.xlu1 }
 0x4d3   : > { %1094 = vst.msk [vmem:[%s2130_s23 + $0x30] sm:$0xff] %vm1087_vm0, %v1077_v18 }
 0x4d6   : > { %v1078_v19 = vpop.trf.xlu1 }
 0x4d7   : > { %1095 = vst.msk [vmem:[%s2130_s23 + $0x38] sm:$0xff] %vm1087_vm0, %v1078_v19 }
 0x4da   : > { %v1079_v20 = vpop.trf.xlu1 }
 0x4db   : > { %1096 = vst.msk [vmem:[%s2130_s23 + $0x40] sm:$0xff] %vm1087_vm0, %v1079_v20 }
 0x4de   : > { %v1080_v21 = vpop.trf.xlu1 }
 0x4df   : > { %1097 = vst.msk [vmem:[%s2130_s23 + $0x48] sm:$0xff] %vm1087_vm0, %v1080_v21 }
 0x4e2   : > { %v1081_v22 = vpop.trf.xlu1 }
 0x4e3   : > { %1098 = vst.msk [vmem:[%s2130_s23 + $0x50] sm:$0xff] %vm1087_vm0, %v1081_v22 }
 0x4e6   : > { %v1082_v23 = vpop.trf.xlu1 }
 0x4e7   : > { %1099 = vst.msk [vmem:[%s2130_s23 + $0x58] sm:$0xff] %vm1087_vm0, %v1082_v23 }
 0x4ea   : > { %v1083_v24 = vpop.trf.xlu1 }
 0x4eb   : > { %1100 = vst.msk [vmem:[%s2130_s23 + $0x60] sm:$0xff] %vm1087_vm0, %v1083_v24 }
 0x4ee   : > { %v1084_v25 = vpop.trf.xlu1 }
 0x4ef   : > { %1101 = vst.msk [vmem:[%s2130_s23 + $0x68] sm:$0xff] %vm1087_vm0, %v1084_v25 }
 0x4f1   : > { %1110 = sbr.rel (!%p1932_p4) target bundleno = 1321 (0x529), region = 60 }
 0x4f2   : > { %v1085_v26 = vpop.trf.xlu1 }
 0x4f3   : > { %1102 = vst.msk [vmem:[%s2130_s23 + $0x70] sm:$0xff] %vm1087_vm0, %v1085_v26 }
 0x4f6   : > { %v1086_v27 = vpop.trf.xlu1 }
 0x4f7   : > { %1103 = vst.msk [vmem:[%s2130_s23 + $0x78] sm:$0xff] %vm1087_vm0, %v1086_v27 }
 0x4f8   : > { %s2284_s30 = smov (!%p1113_p8, %s1112_s30), 16 }
 0x4f9   : > { %s1417_s28 = sshll.u32 %s2284_s30, 7 }
 0x4fa   : > { %p1420_p9 = scmp.eq.s32.totalorder %s1417_s28, 0 }
 0x4fb   : > { %s2177_s19 = sshrl.u32 (!%p1420_p9), %s2284_s30, 4 }
 0x4fc   : > { %1121 = sbr.rel (%p1420_p9) target bundleno = 1321 (0x529), region = 64  ;;  %p1421_p10 = scmp.le.s32.totalorder (!%p1420_p9), %s2177_s19, 0 }
 0x503   : > { %1335 = sbr.rel (%p1421_p10) target bundleno = 1300 (0x514), region = 140  ;;  %s2277_s12 = smov (!%p1421_p10), %s2171_s27 }
 0x504   : > { %s2278_s17 = smov (!%p1421_p10), %s2130_s23  ;;  %s2186_s18 = smov (!%p1421_p10), 0  }
 0x505   : > { %s2188_s29 = smov (!%p1421_p10), 0  }
 0x50a LB: >> { %v1213_v28 = vld [vmem:[%s1827_s17] sm:$0xff]  ;;  %v1215_v29 = vld [vmem:[%s1827_s17 + $0x8] sm:$0xff]  ;;  %v1217_v30 = vld [vmem:[%s1827_s17 + $0x10] sm:$0xff]  ;;  %s1245_s11 = sadd.s32 1, %s1831_s18  ;;  %s1207_s29 = sadd.s32 1, %s1835_s29   ;;  %s1835_s29 = sphi %s2188_s29, %s1207_s29   ;;  %s1831_s18 = sphi %s2186_s18, %s2279_s18   ;;  %s1827_s17 = sphi %s2278_s17, %s1250_s17   ;;  %s1823_s12 = sphi %s2277_s12, %s1251_s12  }
 0x50b   : >> { %1214 = vst [vmem:[%s1823_s12] sm:$0xff] %v1213_v28  ;;  %1216 = vst [vmem:[%s1823_s12 + $0x8] sm:$0xff] %v1215_v29  ;;  %v1219_v31 = vld [vmem:[%s1827_s17 + $0x18] sm:$0xff]  ;;  %v1221_v32 = vld [vmem:[%s1827_s17 + $0x20] sm:$0xff]  ;;  %p1246_p11 = scmp.ge.s32.totalorder %s1245_s11, %s2177_s19  ;;  %p1206_p12 = scmp.ge.s32.totalorder %s1207_s29, %s2177_s19 }
 0x50c   : >> { %1218 = vst [vmem:[%s1823_s12 + $0x10] sm:$0xff] %v1217_v30  ;;  %v1223_v33 = vld [vmem:[%s1827_s17 + $0x28] sm:$0xff]  ;;  %1220 = vst [vmem:[%s1823_s12 + $0x18] sm:$0xff] %v1219_v31  ;;  %v1225_v34 = vld [vmem:[%s1827_s17 + $0x30] sm:$0xff] }
 0x50d   : >> { %1222 = vst [vmem:[%s1823_s12 + $0x20] sm:$0xff] %v1221_v32  ;;  %1224 = vst [vmem:[%s1823_s12 + $0x28] sm:$0xff] %v1223_v33  ;;  %v1227_v35 = vld [vmem:[%s1827_s17 + $0x38] sm:$0xff]  ;;  %v1229_v36 = vld [vmem:[%s1827_s17 + $0x40] sm:$0xff]  ;;  %s2286_s11 = smov (%p1246_p11, %s1245_s11), 0  ;;  %1209 = sbr.rel (!%p1206_p12) target bundleno = 1290 (0x50a), region = 146 }
 0x50e   : >> { %1226 = vst [vmem:[%s1823_s12 + $0x30] sm:$0xff] %v1225_v34  ;;  %1228 = vst [vmem:[%s1823_s12 + $0x38] sm:$0xff] %v1227_v35  ;;  %v1231_v37 = vld [vmem:[%s1827_s17 + $0x48] sm:$0xff]  ;;  %v1233_v38 = vld [vmem:[%s1827_s17 + $0x50] sm:$0xff]  ;;  %s1422_s14 = sshll.u32 %s2286_s11, 7  ;;  %s2279_s18 = smov %s2286_s11 }
 0x50f   : >> { %1230 = vst [vmem:[%s1823_s12 + $0x40] sm:$0xff] %v1229_v36  ;;  %v1235_v39 = vld [vmem:[%s1827_s17 + $0x58] sm:$0xff]  ;;  %1232 = vst [vmem:[%s1823_s12 + $0x48] sm:$0xff] %v1231_v37  ;;  %v1237_v40 = vld [vmem:[%s1827_s17 + $0x60] sm:$0xff] }
 0x510   : >> { %1234 = vst [vmem:[%s1823_s12 + $0x50] sm:$0xff] %v1233_v38  ;;  %1236 = vst [vmem:[%s1823_s12 + $0x58] sm:$0xff] %v1235_v39  ;;  %v1239_v41 = vld [vmem:[%s1827_s17 + $0x68] sm:$0xff]  ;;  %v1241_v42 = vld [vmem:[%s1827_s17 + $0x70] sm:$0xff] }
 0x511   : >> { %1238 = vst [vmem:[%s1823_s12 + $0x60] sm:$0xff] %v1237_v40  ;;  %1240 = vst [vmem:[%s1823_s12 + $0x68] sm:$0xff] %v1239_v41  ;;  %v1243_v43 = vld [vmem:[%s1827_s17 + $0x78] sm:$0xff]  ;;  %s1250_s17 = scalar_lea.vmem %s2130_s23, %s1422_s14 [#allocation2]  }
 0x512   : >> { %1242 = vst [vmem:[%s1823_s12 + $0x70] sm:$0xff] %v1241_v42  ;;  %1244 = vst [vmem:[%s1823_s12 + $0x78] sm:$0xff] %v1243_v43  ;;  %s1251_s12 = scalar_lea.vmem %s2171_s27, %s1422_s14  }
 0x514 PF: > { %s2246_s15 = sand.u32 15, %s2284_s30   ;;  %s1433_s20 = sshll.u32 %s2177_s19, 7 }
 0x515   : > { %s1256_s21 = scalar_lea.vmem %s2130_s23, %s1433_s20 [#allocation2]   ;;  %s1258_s22 = scalar_lea.vmem %s2171_s27, %s1433_s20  }
 0x516   : > { %p1427_p13 = scmp.le.s32.totalorder %s2246_s15, 0 }
 0x517   : > { %s1837_s24 = smov (!%p1427_p13), %s1258_s22   ;;  %s1841_s25 = smov (!%p1427_p13), %s1256_s21  }
 0x518   : > { %1349 = sbr.rel (%p1427_p13) target bundleno = 1321 (0x529), region = 151  ;;  %s1845_s26 = smov (!%p1427_p13), 0  }
 0x519   : > { %s1849_s28 = smov (!%p1427_p13), 0  }
 0x51f LB: >> { %v1268_v44 = vld [vmem:[%s1843_s25] sm:$0xff]  ;;  %s1270_s30 = sadd.s32 1, %s1847_s26  ;;  %s1262_s28 = sadd.s32 1, %s1851_s28   ;;  %s1851_s28 = sphi %s1849_s28, %s1262_s28   ;;  %s1847_s26 = sphi %s1845_s26, %s1846_s26   ;;  %s1843_s25 = sphi %s1841_s25, %s1275_s25   ;;  %s1839_s24 = sphi %s1837_s24, %s1276_s24  }
 0x520   : >> { %1269 = vst [vmem:[%s1839_s24] sm:$0xff] %v1268_v44  ;;  %p1271_p0 = scmp.ge.s32.totalorder %s1270_s30, %s2246_s15  ;;  %p1261_p1 = scmp.ge.s32.totalorder %s1262_s28, %s2246_s15 }
 0x522   : >> { %s2288_s30 = smov (%p1271_p0, %s1270_s30), 0  ;;  %1264 = sbr.rel (!%p1261_p1) target bundleno = 1311 (0x51f), region = 157 }
 0x523   : >> { %s1428_s23 = sshll.u32 %s2288_s30, 3  ;;  %s1846_s26 = smov %s2288_s30  }
 0x524   : >> { %s1275_s25 = scalar_lea.vmem %s1256_s21, %s1428_s23 [#allocation2]   ;;  %s1276_s24 = scalar_lea.vmem %s1258_s22, %s1428_s23  }
 0x529 PF: > { %p16_p2 = scmp.ge.s32.totalorder %s1922_s13, 4   ;;  %s2280_s30 = smov %s1815_s10 }
 0x52a   : > { %s2281_s10 = smov %s1930_s16  ;;  %s2282_s11 = smov %s1922_s13 }
 0x52b   :  { %18 = sbr.rel (!%p16_p2) target bundleno = 2 (0x2), region = 168 }

</bundles_post_ra>
